<compile_context>
chip_gen: v6e
topology: v6e:2x2x1
jax: 0.10.0
libtpu: 0.0.40
codegen_flags: <defaults>
</compile_context>

<pallas_src>
import math
import functools

import jax
import jax.numpy as jnp
from jax.experimental import pallas as pl
from jax.experimental.pallas import tpu as pltpu


def _round_up(x, m):
    return ((x + m - 1) // m) * m


def _cdiv(a, b):
    return -(-a // b)


# --------------------------------------------------------------------------
# Kernel
# --------------------------------------------------------------------------
def siren_kernel(x_ref, wt_ref, b_ref, o_ref, *, bf16_sin=False):
    # x_ref : [TM, K]      batch tile (cast in-kernel to the weight dtype)
    # wt_ref: [K, N_pad]   resident; (omega_0 * W)^T, zero-padded columns
    # b_ref : [1, N_pad]   resident f32; omega_0 * b, zero-padded
    # o_ref : [TM, N_pad]  f32 or bf16
    x = x_ref[...].astype(wt_ref.dtype)
    z = jnp.dot(x, wt_ref[...], preferred_element_type=jnp.float32)
    z = z + b_ref[...]
    if bf16_sin:
        # v6e/v7x fast path (2x VPU packing on the saturated slot).
        # NOTE: SIREN preactivations can reach |z| ~ 30+, so the bf16 argument
        # cast costs up to ~0.1 absolute accuracy.  Keep False on v5e.
        z = z.astype(jnp.bfloat16)
    # TODO(synk): replace jnp.sin with a range-reduced minimax polynomial sized
    # to the bounded SIREN preactivation range once a bundle dump confirms the
    # generic sin lowering is the saturated VALU slot.
    o_ref[...] = jnp.sin(z).astype(o_ref.dtype)


# --------------------------------------------------------------------------
# Parameter preparation (done once, not per forward call)
# --------------------------------------------------------------------------
def prepare_siren_params(weight, bias, omega_0=30.0,
                         compute_dtype=jnp.float32, pad_in_to=None):
    """Pre-transpose, omega-fold and lane-pad the SIREN layer parameters.

    Args:
      weight: [out_features, in_features] f32 (PyTorch nn.Linear layout)
      bias:   [out_features] f32
      pad_in_to: optionally zero-pad the input dim to this many rows, so the
        layer can directly consume padded activations from a previous
        `siren_layer(..., slice_output=False)` call.
    Returns:
      wt:  [K_pad, N_pad] compute_dtype  (= (omega_0 * W)^T, zero-padded)
      b2:  [1, N_pad] f32                (= omega_0 * b, zero-padded)
      out_features: int (unpadded output width)
    """
    out_features, in_features = weight.shape
    k_pad = in_features if pad_in_to is None else pad_in_to
    assert k_pad >= in_features
    n_pad = _round_up(out_features, 128)           # lane-dense output stores

    wt = jnp.zeros((k_pad, n_pad), jnp.float32)
    wt = wt.at[:in_features, :out_features].set((omega_0 * weight).T)
    wt = wt.astype(compute_dtype)

    b2 = jnp.zeros((1, n_pad), jnp.float32)
    b2 = b2.at[:, :out_features].set(omega_0 * bias)
    return wt, b2, out_features


# --------------------------------------------------------------------------
# Tile chooser
# --------------------------------------------------------------------------
def _choose_tm(B, K, n_pad, x_item, o_item, tile_m):
    """Pick a batch tile: large (overhead-amortized), VMEM-bounded, mult of 16."""
    budget = 12 * 1024 * 1024                       # double-buffered x/out tiles
    per_row = 2 * (K * x_item + n_pad * o_item)
    tm_cap = max(16, (budget // per_row) // 16 * 16)
    tm = max(16, min(_round_up(tile_m, 16), tm_cap))
    if B <= tm:
        if B > 512:
            # ensure >= 2 grid steps so the "parallel" axis shards across both
            # v7x TensorCores (harmless on single-TC v5e/v6e).
            tm = min(tm_cap, max(256, _round_up(_cdiv(B, 2), 256)))
        else:
            tm = min(tm_cap, _round_up(B, 16))      # single tile, 16-aligned
    return max(16, tm)


# --------------------------------------------------------------------------
# Forward wrapper
# --------------------------------------------------------------------------
def siren_layer(x, wt, b2, out_features, *, tile_m=4096,
                out_dtype=jnp.float32, bf16_sin=False, slice_output=True):
    """Apply a SIREN layer with prepared params (see prepare_siren_params).

    Args:
      x:  [B, K] activations (f32 or bf16; cast per-tile inside the kernel)
      wt: [K, N_pad]  prepared weight
      b2: [1, N_pad]  prepared bias
      out_features: unpadded output width
      out_dtype: output dtype (bf16 halves HBM writeback when acceptable)
      bf16_sin: compute the sine on a bf16 argument (v6e/v7x fast path)
      slice_output: if False, return the padded [B, N_pad] layout (zero in the
        padded columns) so the next layer can consume it without extra HBM
        passes; slice only at the very end of the network.
    Returns:
      [B, out_features] (or [B, N_pad] if slice_output=False)
    """
    B, K = x.shape
    Kw, n_pad = wt.shape
    assert Kw == K, f"in_features mismatch: x has {K}, weight has {Kw}"

    x_item = jnp.dtype(x.dtype).itemsize
    w_item = jnp.dtype(wt.dtype).itemsize
    o_item = jnp.dtype(out_dtype).itemsize

    tm = _choose_tm(B, K, n_pad, x_item, o_item, tile_m)
    grid_m = _cdiv(B, tm)          # ragged last tile: Pallas masks the writeback

    # VMEM: double-buffered x/out tiles + resident weight/bias (2x buffers).
    vmem_est = (2 * tm * K * x_item + 2 * tm * n_pad * o_item
                + 2 * K * n_pad * w_item + 2 * n_pad * 4)
    vmem_limit = int(min(32 * 1024 * 1024,
                         max(int(1.5 * vmem_est), 16 * 1024 * 1024)))

    cost = pl.CostEstimate(
        flops=2 * B * K * n_pad,
        transcendentals=B * n_pad,
        bytes_accessed=(B * K * x_item + K * n_pad * w_item
                        + n_pad * 4 + B * n_pad * o_item),
    )

    kernel = functools.partial(siren_kernel, bf16_sin=bf16_sin)

    out = pl.pallas_call(
        kernel,
        out_shape=jax.ShapeDtypeStruct((B, n_pad), out_dtype),
        grid_spec=pltpu.PrefetchScalarGridSpec(
            num_scalar_prefetch=0,
            grid=(grid_m,),
            in_specs=[
                pl.BlockSpec((tm, K), lambda i: (i, 0)),       # x: batch-tiled
                pl.BlockSpec((K, n_pad), lambda i: (0, 0)),    # weight: resident
                pl.BlockSpec((1, n_pad), lambda i: (0, 0)),    # bias: resident
            ],
            out_specs=pl.BlockSpec((tm, n_pad), lambda i: (i, 0)),
        ),
        compiler_params=pltpu.CompilerParams(
            dimension_semantics=("parallel",),   # batch axis -> both TCs on v7x
            vmem_limit_bytes=vmem_limit,
        ),
        cost_estimate=cost,
    )(x, wt, b2)

    if slice_output:
        out = out[:, :out_features]
    return out


# --------------------------------------------------------------------------
# SIREN initialization (mirrors the PyTorch init rules)
# --------------------------------------------------------------------------
def init_siren_params(key, in_features, out_features, is_first=False,
                      omega_0=30.0):
    kw, kb = jax.random.split(key)
    if is_first:
        bound_w = 1.0 / in_features
    else:
        bound_w = math.sqrt(6.0 / in_features) / omega_0
    weight = jax.random.uniform(
        kw, (out_features, in_features), jnp.float32,
        minval=-bound_w, maxval=bound_w)
    # nn.Linear default bias init: U(-1/sqrt(in_features), 1/sqrt(in_features))
    bound_b = 1.0 / math.sqrt(in_features)
    bias = jax.random.uniform(
        kb, (out_features,), jnp.float32, minval=-bound_b, maxval=bound_b)
    return weight, bias


if __name__ == "__main__":
    key = jax.random.PRNGKey(0)
    k_x, k_p1, k_p2 = jax.random.split(key, 3)

    batch = 200           # not a tile multiple -> exercises the ragged last tile
    in_features = 16
    hidden = 32           # padded to 128 lanes internally
    omega_0 = 30.0

    x = jax.random.uniform(k_x, (batch, in_features), jnp.float32,
                           minval=-1.0, maxval=1.0)
    w1, b1 = init_siren_params(k_p1, in_features, hidden, is_first=True,
                               omega_0=omega_0)
    w2, b2 = init_siren_params(k_p2, hidden, hidden, is_first=False,
                               omega_0=omega_0)

    # References with explicit full-precision matmul (the Pallas f32 matmul is
    # not subject to XLA's default bf16 truncation on TPU).
    def ref_layer(xin, w, b):
        return jnp.sin(omega_0 * (jnp.dot(xin, w.T, precision="highest") + b))

    y1_ref = ref_layer(x, w1, b1)
    y2_ref = ref_layer(y1_ref, w2, b2)

    # ---- f32, small tile -> multi-step ragged batch grid (3 full + 8-row tile)
    wt1, bb1, nf1 = prepare_siren_params(w1, b1, omega_0)
    y = jax.block_until_ready(siren_layer(x, wt1, bb1, nf1, tile_m=64))
    assert y.shape == (batch, hidden)
    assert jnp.allclose(y, y1_ref, atol=1e-4, rtol=1e-4), "f32 tiled mismatch"

    # ---- f32, default (large) tile -> single grid step at this tiny batch
    y = jax.block_until_ready(siren_layer(x, wt1, bb1, nf1))
    assert jnp.allclose(y, y1_ref, atol=1e-4, rtol=1e-4), "f32 default mismatch"

    # ---- two chained layers kept in the padded [B, 128] layout between layers
    #      (no slice / no re-pad of x between layers; slice only at the end)
    n_pad1 = wt1.shape[1]
    wt2, bb2, nf2 = prepare_siren_params(w2, b2, omega_0, pad_in_to=n_pad1)
    h_pad = siren_layer(x, wt1, bb1, nf1, slice_output=False)    # [B, 128]
    y2 = jax.block_until_ready(siren_layer(h_pad, wt2, bb2, nf2))
    assert y2.shape == (batch, hidden)
    assert jnp.allclose(y2, y2_ref, atol=1e-4, rtol=1e-4), "chained mismatch"

    # ---- bf16 weights + bf16 output (f32 MXU accumulation, f32 sine)
    wt1h, bb1h, _ = prepare_siren_params(w1, b1, omega_0,
                                         compute_dtype=jnp.bfloat16)
    yh = jax.block_until_ready(
        siren_layer(x, wt1h, bb1h, nf1, tile_m=64, out_dtype=jnp.bfloat16))
    assert yh.shape == (batch, hidden) and yh.dtype == jnp.bfloat16
    assert jnp.allclose(yh.astype(jnp.float32), y1_ref, atol=1e-1), \
        "bf16 weight/output path mismatch"

    # ---- bf16 sine argument (v6e/v7x VPU fast path); |omega*(xW+b)| can reach
    #      ~30+, so the bf16 argument cast is only loosely accurate.
    yhs = jax.block_until_ready(
        siren_layer(x, wt1, bb1, nf1, out_dtype=jnp.bfloat16, bf16_sin=True))
    yhs_f32 = yhs.astype(jnp.float32)
    assert jnp.all(jnp.isfinite(yhs_f32))
    assert jnp.allclose(yhs_f32, y1_ref, atol=2.5e-1), "bf16-sin path mismatch"

    print("KERNEL_OK")
</pallas_src>

<mosaic_0001>
module attributes {stable_mosaic.version = 11 : i64} {
  func.func @siren_kernel(%arg0: i32, %arg1: memref<64x16xf32, #tpu.memory_space<vmem>>, %arg2: memref<16x128xf32, #tpu.memory_space<vmem>>, %arg3: memref<1x128xf32, #tpu.memory_space<vmem>>, %arg4: memref<64x128xf32, #tpu.memory_space<vmem>>) attributes {dimension_semantics = [#tpu.dimension_semantics<parallel>], iteration_bounds = array<i64: 4>, scalar_prefetch = 0 : i64, scratch_operands = 0 : i64, tpu.core_type = #tpu.core_type<tc>, window_params = [{transform_indices = @transform_0, window_bounds = array<i64: 64, 16>}, {pipeline_mode = #tpu.pipeline_mode<synchronous>, transform_indices = @transform_1, window_bounds = array<i64: 16, 128>}, {pipeline_mode = #tpu.pipeline_mode<synchronous>, transform_indices = @transform_2, window_bounds = array<i64: 1, 128>}, {transform_indices = @transform_3, window_bounds = array<i64: 64, 128>}]} {
    %c0 = arith.constant 0 : index
    %c0_0 = arith.constant 0 : index
    %0 = vector.load %arg1[%c0, %c0_0] : memref<64x16xf32, #tpu.memory_space<vmem>>, vector<64x16xf32>
    %c0_1 = arith.constant 0 : index
    %c0_2 = arith.constant 0 : index
    %1 = vector.load %arg2[%c0_1, %c0_2] : memref<16x128xf32, #tpu.memory_space<vmem>>, vector<16x128xf32>
    %cst = arith.constant dense<0.000000e+00> : vector<64x128xf32>
    %2 = tpu.matmul %0, %1, %cst {dimension_numbers = #tpu.dot_dimension_numbers<[1], [0], [0], [1], [0, 0, 1, 1], [], []>} : vector<64x16xf32>, vector<16x128xf32>, vector<64x128xf32> -> vector<64x128xf32>
    %c0_3 = arith.constant 0 : index
    %c0_4 = arith.constant 0 : index
    %3 = vector.load %arg3[%c0_3, %c0_4] : memref<1x128xf32, #tpu.memory_space<vmem>>, vector<1x128xf32>
    %4 = vector.broadcast %3 : vector<1x128xf32> to vector<64x128xf32>
    %5 = arith.addf %2, %4 : vector<64x128xf32>
    %6 = math.sin %5 : vector<64x128xf32>
    %c0_5 = arith.constant 0 : index
    %c0_6 = arith.constant 0 : index
    %7 = vector.load %arg4[%c0_5, %c0_6] : memref<64x128xf32, #tpu.memory_space<vmem>>, vector<64x128xf32>
    tpu.vector_store %arg4[%c0_5, %c0_6], %6 {strides = array<i32>} : memref<64x128xf32, #tpu.memory_space<vmem>>, vector<64x128xf32>,
    return
  }
  func.func @transform_0(%arg0: i32) -> (i32, i32) {
    %c0_i32 = arith.constant 0 : i32
    %c0_i32_0 = arith.constant 0 : i32
    return %arg0, %c0_i32 : i32, i32
  }
  func.func @transform_1(%arg0: i32) -> (i32, i32) {
    %c0_i32 = arith.constant 0 : i32
    %c0_i32_0 = arith.constant 0 : i32
    %c0_i32_1 = arith.constant 0 : i32
    return %c0_i32, %c0_i32_0 : i32, i32
  }
  func.func @transform_2(%arg0: i32) -> (i32, i32) {
    %c0_i32 = arith.constant 0 : i32
    %c0_i32_0 = arith.constant 0 : i32
    %c0_i32_1 = arith.constant 0 : i32
    return %c0_i32, %c0_i32_0 : i32, i32
  }
  func.func @transform_3(%arg0: i32) -> (i32, i32) {
    %c0_i32 = arith.constant 0 : i32
    %c0_i32_0 = arith.constant 0 : i32
    return %arg0, %c0_i32 : i32, i32
  }
}

</mosaic_0001>

<bundles_post_ra>
// kernel: tpu_custom_call.1
= control target key start
LH: loop header
LB: loop body
LE: loop exit
PB: predicated region body
PF: predicated region fallthrough
CT: control target
= control target key end

     0   :  { %8 = vsyncpa [#allocation3], 0  ;;  %s2252_s0 = inlined_call_operand.vmem [shape: f32[200,16], index: 0, kind: input, shape index: {}]   ;;  %s2253_s1 = inlined_call_operand.vmem [shape: f32[16,128], index: 1, kind: input, shape index: {}]   ;;  %s2254_s2 = inlined_call_operand.vmem [shape: f32[1,128], index: 2, kind: input, shape index: {}]   ;;  %s2255_s3 = inlined_call_operand.hbm [shape: f32[200,128], index: 3, kind: output, shape index: {}]  }
   0x1   :  { %10 = vsyncpa [#allocation3 + $0x1], 0  ;;  %s1555_s12 = smov 0   ;;  %s1557_s13 = smov 0  }
   0x2   :  { %s1559_s14 = smov 0   ;;  %s1561_s15 = smov 0  }
   0x3 LB: > { %s1576_s16 = sadd.s32 4294967295, %s1524_s15   ;;  %s1265_s17 = sadd.s32 4294967294, %s1524_s15   ;;  %s1524_s15 = sphi %s1561_s15, %s2273_s15   ;;  %s1520_s14 = sphi %s1559_s14, %s2272_s14   ;;  %s1516_s13 = sphi %s1557_s13, %s2271_s13   ;;  %s1512_s12 = sphi %s1555_s12, %s2270_s12  }
   0x4   : > { %s1580_s18 = sadd.s32 1, %s1524_s15   ;;  %s91_s19 = sadd.s32 1, %s1520_s14 }
   0x5   : > { %s88_s20 = ssub.s32 %s1524_s15, %s1580_s18  ;;  %p101_p0 = scmp.ne.s32.totalorder %s1520_s14, %s1516_s13 }
   0x6   : > { %p89_p1 = scmp.eq.s32.totalorder %s88_s20, 0  ;;  %p102_p2 = scmp.eq.s32.totalorder %s1576_s16, 3 }
   0x7   : > { %p107_p3 = scmp.ne.s32.totalorder %s1516_s13, %s1512_s12  ;;  %p108_p4 = scmp.eq.s32.totalorder %s1265_s17, 3 }
   0x8   : > { %s1591_s21 = scalar_select %p89_p1, %s1520_s14, %s91_s19  }
   0x9   : > { %p1593_p5 = por %p102_p2, %p101_p0  ;;  %p1597_p6 = por %p108_p4, %p107_p3 }
   0xa   : > { %p1268_p7 = scmp.ge.s32.totalorder %s1524_s15, 1  ;;  %p149_p8 = scmp.lt.s32.totalorder %s1524_s15, 5 }
   0xc   : > { %p150_p9 = pnand %p1268_p7, %p149_p8 }
   0xd   : > { %s1610_s28 = sshll.u32 (!%p150_p9), %s1576_s16, 3  ;;  %s174_s7 = sand.u32 (!%p150_p9), 1, %s1516_s13  }
   0xe   : > { %153 = sbr.rel (%p150_p9) target bundleno = 485 (0x1e5), region = 32  ;;  %p182_p10 = scmp.lt.s32.totalorder (!%p150_p9), %s1610_s28, 24 }
   0xf   : > { %s1269_s10 = sshll.u32 (!%p150_p9), %s174_s7, 6  ;;  %s2192_s20 = scalar_lea.sflag (!%p150_p9), [#allocation3], %s174_s7 }
  0x10   : > { %s1934_s11 = scalar_lea.vmem (!%p150_p9), [#allocation2], %s1269_s10 }
  0x13   : > { %v205_v0 = vld [vmem:[%s2253_s1 + $0x8] sm:$0xff]  ;;  %v204_v1 = vld [vmem:[%s2253_s1] sm:$0xff]  ;;  %s183_s29 = scalar_select %p182_p10, %s1610_s28, 24  ;;  %vm213_vm0 = vcmask 130048   ;;  %v1526_v46 = vmov 683565275  }
  0x14   : > { %1333 = vmatprep.subr.mxu0 %v205_v0  ;;  %1349 = vmatprep.subr.mxu1 %v205_v0  ;;  %v1629_v10 = vld [vmem:[%s2254_s2] ss:$0 sm:$0xff]  ;;  %v1527_v50 = vmov 2475754826   ;;  %v1528_v52 = vmov 2131351028  }
  0x15   : > { %1334 = vmatpush3.msra.mxu0 %v205_v0  ;;  %1351 = vmatpush3.msra.mxu1 %v205_v0  ;;  %s1271_s30 = sshll.u32 %s183_s29, 3  ;;  %v1529_v54 = vmov 2102212464   ;;  %v1530_v56 = vmov 920167782   ;;  %s1192_s24 = ssub.s32 (%p1593_p5), 25, %s1610_s28 }
  0x16   : > { %1335 = vmatprep.subr.mxu0 %v204_v1  ;;  %1350 = vmatprep.subr.mxu1 %v204_v1  ;;  %s185_s6 = scalar_lea.vmem %s2252_s0, %s1271_s30  ;;  %v1531_v63 = vmov 1326507024   ;;  %p1193_p11 = scmp.lt.s32.totalorder (%p1593_p5), %s1192_s24, 8 }
  0x17   : > { %1336 = vmatpush3.msra.mxu0 %v204_v1  ;;  %1352 = vmatpush3.msra.mxu1 %v204_v1  ;;  %v196_v2 = vld [vmem:[%s185_s6] sm:$0xff]  ;;  %v197_v4 = vld [vmem:[%s185_s6 + $0x8] sm:$0xff]  ;;  %v198_v6 = vld [vmem:[%s185_s6 + $0x10] sm:$0xff] }
  0x18   : > { %v200_v3 = vld [vmem:[%s185_s6 + $0x20] sm:$0xff]  ;;  %1337 = vmatprep.mubr.msk.f32.mxu0 %vm213_vm0, %v196_v2  ;;  %v201_v5 = vld [vmem:[%s185_s6 + $0x28] sm:$0xff]  ;;  %v202_v7 = vld [vmem:[%s185_s6 + $0x30] sm:$0xff] }
  0x19   : > { %1343 = vmatprep.mubr.msk.f32.mxu1 %vm213_vm0, %v200_v3  ;;  %1338 = vmatmul.mubr.msk.f32.vlgmr.msra.gmra.mxu0 %vm213_vm0, %v197_v4  ;;  %v199_v8 = vld [vmem:[%s185_s6 + $0x18] sm:$0xff] }
  0x1a   : > { %1344 = vmatmul.mubr.msk.f32.vlgmr.msra.gmra.mxu1 %vm213_vm0, %v201_v5  ;;  %1340 = vmatprep.mubr.msk.f32.mxu0 %vm213_vm0, %v198_v6  ;;  %v203_v9 = vld [vmem:[%s185_s6 + $0x38] sm:$0xff] }
  0x1b   : > { %1346 = vmatprep.mubr.msk.f32.mxu1 %vm213_vm0, %v202_v7 }
  0x1d   : > { %1341 = vmatmul.mubr.msk.f32.gmra.mxu0 %vm213_vm0, %v199_v8 }
  0x1e   : > { %1347 = vmatmul.mubr.msk.f32.gmra.mxu1 %vm213_vm0, %v203_v9 }
  0xd9   : > { %v1339_v11 = vpop.f32.mrf.mxu0 }
  0xda   : > { %v1345_v12 = vpop.f32.mrf.mxu1  ;;  %v1632_v13 = vadd.f32 %v1339_v11, %v1629_v10 }
  0xdb   : > { %v1635_v14 = vadd.f32 %v1345_v12, %v1629_v10  ;;  %v304_v15 = vpop.f32.mrf.mxu0 }
  0xdc   : > { %v447_v16 = vand.u32 2147483647, %v1632_v13  ;;  %v450_v17 = vand.u32 2139095040, %v1632_v13  ;;  %v1644_v22 = vadd.f32 %v1629_v10, %v304_v15  ;;  %v324_v34 = vpop.f32.mrf.mxu1  ;;  %vm449_vm14 = vcmp.lt.s32.totalorder %v1632_v13, 0 }
  0xdd   : > { %v863_v18 = vand.u32 2147483647, %v1635_v14  ;;  %v866_v19 = vand.u32 2139095040, %v1635_v14  ;;  %v1651_v40 = vadd.f32 %v1629_v10, %v324_v34 }
  0xde   : > { %v451_v20 = vshrl.u32 %v450_v17, 23  ;;  %v454_v21 = vand.u32 8388607, %v447_v16  ;;  %v346_v27 = vand.u32 2139095040, %v1644_v22  ;;  %v343_v32 = vand.u32 2147483647, %v1644_v22 }
  0xdf   : > { %v867_v23 = vshrl.u32 %v866_v19, 23  ;;  %v870_v24 = vand.u32 8388607, %v863_v18  ;;  %vm1756_vm15 = vcmp.le.f32.partialorder %v447_v16, 0.7853982 }
  0xe0   : > { %v1285_v25 = vadd.s32 4294967169, %v451_v20  ;;  %v455_v28 = vor.u32 8388608, %v454_v21  ;;  %v347_v33 = vshrl.u32 %v346_v27, 23  ;;  %v1661_v44 = vand.u32 8388607, %v343_v32 }
  0xe1   : > { %v1301_v26 = vadd.s32 4294967169, %v867_v23  ;;  %v871_v30 = vor.u32 8388608, %v870_v24 }
  0xe2   : > { %v457_v29 = vadd.s32 1, %v1285_v25  ;;  %v1281_v36 = vadd.s32 4294967169, %v347_v33  ;;  %v1653_v41 = vshll.u32 %v455_v28, 8 }
  0xe3   : > { %v873_v31 = vadd.s32 1, %v1301_v26  ;;  %v1657_v43 = vshll.u32 %v871_v30, 8 }
  0xe4   : > { %vm458_vm1 = vcmp.gt.s32.totalorder %v457_v29, 0  ;;  %v1664_v49 = vadd.s32 1, %v1281_v36 }
  0xe5   : > { %v459_v35 = vsel %vm458_vm1, %v457_v29, 0  ;;  %vm874_vm2 = vcmp.gt.s32.totalorder %v873_v31, 0 }
  0xe6   : > { %v460_v37 = vshrl.u32 %v459_v35, 5  ;;  %v461_v38 = vand.u32 31, %v459_v35  ;;  %v875_v39 = vsel %vm874_vm2, %v873_v31, 0  ;;  %vm354_vm12 = vcmp.gt.s32.totalorder %v1664_v49, 0 }
  0xe7   : > { %v1655_v42 = vshrl.u32 %v875_v39, 5  ;;  %v877_v48 = vand.u32 31, %v875_v39 }
  0xe8   : > { %v462_v45 = vsub.s32 32, %v461_v38  ;;  %v464_v47 = vshll.u32 %v1526_v46, %v461_v38  ;;  %v467_v51 = vshll.u32 %v1527_v50, %v461_v38  ;;  %v470_v53 = vshll.u32 %v1528_v52, %v461_v38 }
  0xe9   : > { %v473_v55 = vshll.u32 %v1529_v54, %v461_v38  ;;  %v476_v57 = vshll.u32 %v1530_v56, %v461_v38  ;;  %vm479_vm3 = vcmp.lt.s32.totalorder %v460_v37, 1  ;;  %vm480_vm4 = vcmp.lt.s32.totalorder %v460_v37, 2 }
  0xea   : > { %v465_v58 = vshrl.u32 %v1527_v50, %v462_v45  ;;  %v468_v59 = vshrl.u32 %v1528_v52, %v462_v45  ;;  %v471_v60 = vshrl.u32 %v1529_v54, %v462_v45  ;;  %v463_v61 = vshrl.u32 %v1526_v46, %v462_v45 }
  0xeb   : > { %v474_v62 = vshrl.u32 %v1530_v56, %v462_v45  ;;  %v477_v0 = vshrl.u32 %v1531_v63, %v462_v45  ;;  %v878_v4 = vsub.s32 32, %v877_v48  ;;  %vm481_vm5 = vcmp.lt.s32.totalorder %v460_v37, 3 }
  0xec   : > { %v466_v1 = vor.u32 %v465_v58, %v464_v47  ;;  %v469_v2 = vor.u32 %v468_v59, %v467_v51  ;;  %v472_v3 = vor.u32 %v471_v60, %v470_v53  ;;  %vm482_vm6 = vcmp.lt.s32.totalorder %v460_v37, 4 }
  0xed   : > { %v475_v5 = vor.u32 %v474_v62, %v473_v55  ;;  %v478_v6 = vor.u32 %v477_v0, %v476_v57  ;;  %v880_v19 = vshll.u32 %v1526_v46, %v877_v48  ;;  %v881_v23 = vshrl.u32 %v1527_v50, %v878_v4 }
  0xee   : > { %v483_v7 = vsel %vm479_vm3, %v463_v61, %v466_v1  ;;  %v484_v8 = vsel %vm482_vm6, %v472_v3, 2102212464  ;;  %v487_v9 = vsel %vm479_vm3, %v466_v1, %v469_v2  ;;  %v491_v11 = vsel %vm479_vm3, %v469_v2, %v472_v3 }
  0xef   : > { %v485_v12 = vsel %vm481_vm5, %v469_v2, %v484_v8  ;;  %v488_v15 = vsel %vm482_vm6, %v475_v5, 920167782  ;;  %v492_v17 = vsel %vm482_vm6, %v478_v6, 1326507024  ;;  %v883_v24 = vshll.u32 %v1527_v50, %v877_v48 }
  0xf0   : > { %v489_v20 = vsel %vm481_vm5, %v472_v3, %v488_v15  ;;  %v493_v21 = vsel %vm481_vm5, %v475_v5, %v492_v17  ;;  %v486_v25 = vsel %vm480_vm4, %v483_v7, %v485_v12  ;;  %v884_v28 = vshrl.u32 %v1528_v52, %v878_v4 }
  0xf1   : > { %v490_v26 = vsel %vm480_vm4, %v487_v9, %v489_v20  ;;  %v494_v27 = vsel %vm480_vm4, %v491_v11, %v493_v21  ;;  %v882_v34 = vor.u32 %v881_v23, %v880_v19  ;;  %v886_v36 = vshll.u32 %v1528_v52, %v877_v48 }
  0xf2   : > { %v1687_v29 = vmul.u32.u64.low %v1653_v41, %v494_v27  ;;  %v1688_v30 = vmul.u32.u64.high %v1653_v41, %v494_v27, %v1687_v29  ;;  %v1691_v31 = vmul.u32.u64.low %v1653_v41, %v490_v26  ;;  %v1692_v33 = vmul.u32.u64.high %v1653_v41, %v490_v26, %v1691_v31 }
  0xf3   : > { %v885_v35 = vor.u32 %v884_v28, %v883_v24  ;;  %v887_v38 = vshrl.u32 %v1529_v54, %v878_v4  ;;  %v879_v39 = vshrl.u32 %v1526_v46, %v878_v4  ;;  %v889_v37 = vshll.u32 %v1529_v54, %v877_v48 }
  0xf4   : > { %v890_v45 = vshrl.u32 %v1530_v56, %v878_v4  ;;  %v893_v47 = vshrl.u32 %v1531_v63, %v878_v4  ;;  %v502_v51 = vmul.u32 %v1653_v41, %v486_v25  ;;  %v892_v55 = vshll.u32 %v1530_v56, %v877_v48 }
  0xf5   : > { %v888_v53 = vor.u32 %v887_v38, %v886_v36  ;;  %vm895_vm7 = vcmp.lt.s32.totalorder %v1655_v42, 1  ;;  %vm504_vm8 = vc.u32 %v1688_v30, %v1691_v31  ;;  %v505_v57 = vadd.s32 1, %v1692_v33 }
  0xf6   : > { %v891_v58 = vor.u32 %v890_v45, %v889_v37  ;;  %vm896_vm9 = vcmp.lt.s32.totalorder %v1655_v42, 2  ;;  %v894_v59 = vor.u32 %v893_v47, %v892_v55  ;;  %vm897_vm10 = vcmp.lt.s32.totalorder %v1655_v42, 3 }
  0xf7   : > { %vm898_vm11 = vcmp.lt.s32.totalorder %v1655_v42, 4  ;;  %v903_v60 = vsel %vm895_vm7, %v882_v34, %v885_v35  ;;  %v506_v41 = vsel %vm504_vm8, %v505_v57, %v1692_v33  ;;  %v907_v48 = vsel %vm895_vm7, %v885_v35, %v888_v53 }
  0xf8   : > { %v900_v61 = vsel %vm898_vm11, %v888_v53, 2102212464  ;;  %v904_v62 = vsel %vm898_vm11, %v891_v58, 920167782  ;;  %v507_v0 = vadd.s32 %v506_v41, %v502_v51  ;;  %v899_v1 = vsel %vm895_vm7, %v879_v39, %v882_v34 }
  0xf9   : > { %v905_v2 = vsel %vm897_vm10, %v888_v53, %v904_v62  ;;  %v908_v3 = vsel %vm898_vm11, %v894_v59, 1326507024  ;;  %v901_v4 = vsel %vm897_vm10, %v885_v35, %v900_v61  ;;  %v355_v17 = vsel %vm354_vm12, %v1664_v49, 0 }
  0xfa   : > { %v906_v5 = vsel %vm896_vm9, %v903_v60, %v905_v2  ;;  %v909_v6 = vsel %vm897_vm10, %v891_v58, %v908_v3  ;;  %v508_v7 = vadd.s32 536870912, %v507_v0  ;;  %v902_v20 = vsel %vm896_vm9, %v899_v1, %v901_v4 }
  0xfb   : > { %v910_v8 = vsel %vm896_vm9, %v907_v48, %v909_v6  ;;  %v1715_v9 = vmul.u32.u64.low %v1657_v43, %v906_v5  ;;  %v1716_v11 = vmul.u32.u64.high %v1657_v43, %v906_v5, %v1715_v9  ;;  %v357_v21 = vand.u32 31, %v355_v17 }
  0xfc   : > { %v1720_v12 = vmul.u32.u64.low %v1657_v43, %v910_v8  ;;  %v1721_v15 = vmul.u32.u64.high %v1657_v43, %v910_v8, %v1720_v12  ;;  %v509_v19 = vshrl.u32 %v508_v7, 30  ;;  %v762_v23 = vand.u32 2139095040, %v1651_v40 }
  0xfd   : > { %v921_v25 = vadd.s32 1, %v1716_v11  ;;  %v351_v26 = vor.u32 8388608, %v1661_v44  ;;  %v918_v27 = vmul.u32 %v1657_v43, %v902_v20  ;;  %v358_v28 = vsub.s32 32, %v357_v21 }
  0xfe   : > { %v510_v24 = vshll.u32 %v509_v19, 30  ;;  %vm920_vm13 = vc.u32 %v1721_v15, %v1715_v9  ;;  %v763_v42 = vshrl.u32 %v762_v23, 23  ;;  %v503_v34 = vadd.s32 %v1691_v31, %v1688_v30 }
  0xff   : > { %v922_v49 = vsel %vm920_vm13, %v921_v25, %v1716_v11  ;;  %v1738_v36 = vshll.u32 %v351_v26, 8  ;;  %v759_v43 = vand.u32 2147483647, %v1651_v40  ;;  %v1741_v38 = vshrl.u32 %v355_v17, 5 }
 0x100   : > { %v1732_v29 = vsub.s32 %v507_v0, %v510_v24  ;;  %v923_v33 = vadd.s32 %v922_v49, %v918_v27  ;;  %v361_v39 = vshrl.u32 %v1527_v50, %v358_v28  ;;  %v364_v37 = vshrl.u32 %v1528_v52, %v358_v28 }
 0x101   : > { %v367_v47 = vshrl.u32 %v1529_v54, %v358_v28  ;;  %v370_v51 = vshrl.u32 %v1530_v56, %v358_v28  ;;  %v1748_v30 = vadd.s32 4294967169, %v763_v42  ;;  %v533_v31 = vsub.s32 4, %v509_v19 }
 0x102   : > { %v513_v35 = vsub.s32 0, %v1732_v29  ;;  %v924_v44 = vadd.s32 536870912, %v923_v33  ;;  %v360_v55 = vshll.u32 %v1526_v46, %v357_v21  ;;  %v363_v57 = vshll.u32 %v1527_v50, %v357_v21 }
 0x103   : > { %v366_v60 = vshll.u32 %v1528_v52, %v357_v21  ;;  %v369_v41 = vshll.u32 %v1529_v54, %v357_v21  ;;  %v373_v61 = vshrl.u32 %v1531_v63, %v358_v28  ;;  %v1766_v1 = vand.u32 8388607, %v759_v43 }
 0x104   : > { %v1286_v45 = vmin.u32 %v513_v35, %v1732_v29  ;;  %v1750_v53 = vshrl.u32 %v924_v44, 30  ;;  %v362_v48 = vor.u32 %v361_v39, %v360_v55  ;;  %v365_v0 = vor.u32 %v364_v37, %v363_v57 }
 0x105   : > { %v368_v16 = vor.u32 %v367_v47, %v366_v60  ;;  %v371_v3 = vor.u32 %v370_v51, %v369_v41  ;;  %v372_v4 = vshll.u32 %v1530_v56, %v357_v21  ;;  %v534_v5 = vsel %vm449_vm14, %v533_v31, %v509_v19 }
 0x106   : > { %v515_v59 = vclz %v1286_v45  ;;  %v926_v62 = vshll.u32 %v1750_v53, 30  ;;  %v359_v7 = vshrl.u32 %v1526_v46, %v358_v28  ;;  %vm375_vm0 = vcmp.lt.s32.totalorder %v1741_v38, 1 }
 0x107   : > { %v374_v8 = vor.u32 %v373_v61, %v372_v4  ;;  %vm376_vm2 = vcmp.lt.s32.totalorder %v1741_v38, 2  ;;  %vm377_vm3 = vcmp.lt.s32.totalorder %v1741_v38, 3  ;;  %vm865_vm4 = vcmp.lt.s32.totalorder %v1635_v14, 0 }
 0x108   : > { %v1287_v2 = vadd.s32 4294967294, %v515_v59  ;;  %v1771_v6 = vsub.s32 %v923_v33, %v926_v62  ;;  %vm378_vm5 = vcmp.lt.s32.totalorder %v1741_v38, 4  ;;  %v383_v17 = vsel %vm375_vm0, %v362_v48, %v365_v0 }
 0x109   : > { %v380_v21 = vsel %vm378_vm5, %v368_v16, 2102212464  ;;  %v384_v23 = vsel %vm378_vm5, %v371_v3, 920167782  ;;  %v387_v27 = vsel %vm375_vm0, %v365_v0, %v368_v16  ;;  %v388_v33 = vsel %vm378_vm5, %v374_v8, 1326507024 }
 0x10a   : > { %vm1288_vm1 = vcmp.lt.s32.totalorder %v1287_v2, 0  ;;  %v929_v12 = vsub.s32 0, %v1771_v6  ;;  %v385_v26 = vsel %vm377_vm3, %v368_v16, %v384_v23  ;;  %v536_v35 = vsel %vm1756_vm15, 0, %v534_v5 }
 0x10b   : > { %v518_v11 = vsel %vm1288_vm1, 0, %v1287_v2  ;;  %v386_v42 = vsel %vm376_vm2, %v383_v17, %v385_v26  ;;  %vm1794_vm6 = vcmp.le.f32.partialorder %v863_v18, 0.7853982  ;;  %v379_v39 = vsel %vm375_vm0, %v359_v7, %v362_v48 }
 0x10c   : > { %v519_v19 = vsub.s32 32, %v518_v11  ;;  %v523_v20 = vsub.s32 4294967266, %v518_v11  ;;  %v520_v24 = vshll.u32 %v1732_v29, %v518_v11  ;;  %v1302_v25 = vmin.u32 %v929_v12, %v1771_v6 }
 0x10d   : > { %v949_v47 = vsub.s32 4, %v1750_v53  ;;  %v389_v51 = vsel %vm377_vm3, %v371_v3, %v388_v33  ;;  %v1808_v55 = vmul.u32.u64.low %v1738_v36, %v386_v42  ;;  %v1809_v57 = vmul.u32.u64.high %v1738_v36, %v386_v42, %v1808_v55 }
 0x10e   : > { %v521_v28 = vshrl.u32 %v503_v34, %v519_v19  ;;  %v524_v49 = vadd.s32 127, %v523_v20  ;;  %v931_v44 = vclz %v1302_v25  ;;  %v381_v34 = vsel %vm377_vm3, %v365_v0, %v380_v21  ;;  %v1342_v19 = vpop.f32.mrf.mxu0 }
 0x10f   : > { %v390_v18 = vsel %vm376_vm2, %v387_v27, %v389_v51  ;;  %v382_v60 = vsel %vm376_vm2, %v379_v39, %v381_v34  ;;  %v540_v62 = vadd.s32 3, %v536_v35  ;;  %v919_v48 = vadd.s32 %v1715_v9, %v1721_v15 }
 0x110   : > { %v522_v37 = vor.u32 %v521_v28, %v520_v24  ;;  %v525_v45 = vshll.u32 %v524_v49, 23  ;;  %v1303_v31 = vadd.s32 4294967294, %v931_v44  ;;  %v769_v0 = vadd.s32 1, %v1748_v30 }
 0x111   : > { %v1815_v41 = vmul.u32.u64.low %v1738_v36, %v390_v18  ;;  %v1816_v61 = vmul.u32.u64.high %v1738_v36, %v390_v18, %v1815_v41  ;;  %v950_v4 = vsel %vm865_vm4, %v949_v47, %v1750_v53  ;;  %v398_v7 = vmul.u32 %v1738_v36, %v382_v60 }
 0x112   : > { %v526_v59 = vor.u32 4788187, %v525_v45  ;;  %vm1304_vm7 = vcmp.lt.s32.totalorder %v1303_v31, 0  ;;  %v529_v16 = vcvt.s32.f32 %v522_v37  ;;  %v401_v8 = vadd.s32 1, %v1809_v57 }
 0x113   : > { %v934_v3 = vsel %vm1304_vm7, 0, %v1303_v31  ;;  %vm400_vm8 = vc.u32 %v1816_v61, %v1808_v55  ;;  %vm770_vm9 = vcmp.gt.s32.totalorder %v769_v0, 0  ;;  %v952_v20 = vsel %vm1794_vm6, 0, %v950_v4 }
 0x114   : > { %v527_v2 = vand.u32 2147483647, %v526_v59  ;;  %v935_v38 = vsub.s32 32, %v934_v3  ;;  %v939_v5 = vsub.s32 4294967266, %v934_v3  ;;  %v936_v12 = vshll.u32 %v1771_v6, %v934_v3 }
 0x115   : > { %v402_v30 = vsel %vm400_vm8, %v401_v8, %v1809_v57  ;;  %v771_v17 = vsel %vm770_vm9, %v769_v0, 0  ;;  %v1835_v27 = vadd.f32 %v1342_v19, %v1629_v10  ;;  %v1840_v49 = vand.u32 3, %v540_v62 }
 0x116   : > { %v530_v11 = vmul.f32 %v529_v16, %v527_v2  ;;  %v937_v9 = vshrl.u32 %v919_v48, %v935_v38  ;;  %v940_v15 = vadd.s32 127, %v939_v5  ;;  %v403_v36 = vadd.s32 %v402_v30, %v398_v7 }
 0x117   : > { %v773_v21 = vand.u32 31, %v771_v17  ;;  %v1842_v33 = vadd.s32 3, %v952_v20  ;;  %v767_v44 = vor.u32 8388608, %v1766_v1  ;;  %vm345_vm10 = vcmp.lt.s32.totalorder %v1644_v22, 0 }
 0x118   : > { %v531_v53 = vxor.u32 2147483648, %v530_v11  ;;  %v938_v23 = vor.u32 %v937_v9, %v936_v12  ;;  %v941_v24 = vshll.u32 %v940_v15, 23  ;;  %v404_v25 = vadd.s32 536870912, %v403_v36 }
 0x119   : > { %v774_v26 = vsub.s32 32, %v773_v21  ;;  %v1848_v47 = vshrl.u32 %v771_v17, 5  ;;  %v776_v51 = vshll.u32 %v1526_v46, %v773_v21  ;;  %v779_v57 = vshll.u32 %v1527_v50, %v773_v21 }
 0x11a   : > { %v532_v6 = vsel %vm449_vm14, %v531_v53, %v530_v11  ;;  %v942_v42 = vor.u32 4788187, %v941_v24  ;;  %v405_v35 = vshrl.u32 %v404_v25, 30  ;;  %v945_v37 = vcvt.s32.f32 %v938_v23 }
 0x11b   : > { %v535_v28 = vsel %vm1756_vm15, %v1632_v13, %v532_v6  ;;  %v777_v39 = vshrl.u32 %v1527_v50, %v774_v26  ;;  %v780_v45 = vshrl.u32 %v1528_v52, %v774_v26  ;;  %v783_v31 = vshrl.u32 %v1529_v54, %v774_v26 }
 0x11c   : > { %1431 = vcosq.f32 %v535_v28  ;;  %v943_v34 = vand.u32 2147483647, %v942_v42  ;;  %v406_v58 = vshll.u32 %v405_v35, 30  ;;  %v785_v1 = vshll.u32 %v1529_v54, %v773_v21 }
 0x11d   : > { %1433 = vsinq.f32 %v535_v28  ;;  %v786_v59 = vshrl.u32 %v1530_v56, %v774_v26  ;;  %v778_v41 = vor.u32 %v777_v39, %v776_v51  ;;  %v782_v62 = vshll.u32 %v1528_v52, %v773_v21 }
 0x11e   : > { %v946_v18 = vmul.f32 %v945_v37, %v943_v34  ;;  %v1855_v60 = vsub.s32 %v403_v36, %v406_v58  ;;  %v658_v48 = vand.u32 2139095040, %v1835_v27  ;;  %v781_v2 = vor.u32 %v780_v45, %v779_v57 }
 0x11f   : > { %v787_v16 = vor.u32 %v786_v59, %v785_v1  ;;  %v789_v3 = vshrl.u32 %v1531_v63, %v774_v26  ;;  %v399_v4 = vadd.s32 %v1808_v55, %v1816_v61  ;;  %v784_v5 = vor.u32 %v783_v31, %v782_v62 }
 0x120   : > { %v947_v0 = vxor.u32 2147483648, %v946_v18  ;;  %v409_v38 = vsub.s32 0, %v1855_v60  ;;  %v788_v7 = vshll.u32 %v1530_v56, %v773_v21  ;;  %vm546_vm11 = vcmp.eq.s32.totalorder %v1840_v49, 2 }
 0x121   : > { %v429_v11 = vsub.s32 4, %v405_v35  ;;  %vm791_vm12 = vcmp.lt.s32.totalorder %v1848_v47, 1  ;;  %v1868_v12 = vshll.u32 %v767_v44, 8  ;;  %vm543_vm13 = vcmp.eq.s32.totalorder %v1840_v49, 0 }
 0x122   : > { %v948_v8 = vsel %vm865_vm4, %v947_v0, %v946_v18  ;;  %v1282_v61 = vmin.u32 %v409_v38, %v1855_v60  ;;  %v790_v9 = vor.u32 %v789_v3, %v788_v7  ;;  %vm794_vm14 = vcmp.lt.s32.totalorder %v1848_v47, 4 }
 0x123   : > { %v951_v55 = vsel %vm1794_vm6, %v1635_v14, %v948_v8  ;;  %vm542_vm15 = vcmp.lt.s32.totalorder %v1840_v49, 2  ;;  %v775_v15 = vshrl.u32 %v1526_v46, %v774_v26  ;;  %v799_v30 = vsel %vm791_vm12, %v778_v41, %v781_v2 }
 0x124   : > { %1435 = vcosq.f32 %v951_v55  ;;  %v800_v17 = vsel %vm794_vm14, %v787_v16, 920167782  ;;  %vm539_vm0 = vweird.f32 %v1632_v13  ;;  %vm1885_vm1 = vcmp.le.f32.partialorder %v343_v32, 0.7853982 }
 0x125   : > { %1437 = vsinq.f32 %v951_v55  ;;  %v411_v19 = vclz %v1282_v61  ;;  %vm793_vm2 = vcmp.lt.s32.totalorder %v1848_v47, 3  ;;  %v796_v53 = vsel %vm794_vm14, %v784_v5, 2102212464 }
 0x126   : > { %v430_v20 = vsel %vm345_vm10, %v429_v11, %v405_v35  ;;  %vm792_vm3 = vcmp.lt.s32.totalorder %v1848_v47, 2  ;;  %v801_v36 = vsel %vm793_vm2, %v784_v5, %v800_v17  ;;  %v803_v21 = vsel %vm791_vm12, %v781_v2, %v784_v5 }
 0x127   : > { %v1283_v32 = vadd.s32 4294967294, %v411_v19  ;;  %v795_v23 = vsel %vm791_vm12, %v775_v15, %v778_v41  ;;  %v802_v24 = vsel %vm792_vm3, %v799_v30, %v801_v36  ;;  %v804_v6 = vsel %vm794_vm14, %v790_v9, 1326507024 }
 0x128   : > { %v797_v26 = vsel %vm793_vm2, %v781_v2, %v796_v53  ;;  %v805_v28 = vsel %vm793_vm2, %v787_v16, %v804_v6  ;;  %v1904_v42 = vmul.u32.u64.low %v1868_v12, %v802_v24  ;;  %v1905_v35 = vmul.u32.u64.high %v1868_v12, %v802_v24, %v1904_v42 }
 0x129   : > { %v1432_v25 = vpop.eup %1431  ;;  %vm1284_vm4 = vcmp.lt.s32.totalorder %v1283_v32, 0  ;;  %v806_v34 = vsel %vm792_vm3, %v803_v21, %v805_v28  ;;  %v659_v37 = vshrl.u32 %v658_v48, 23  ;;  %v798_v59 = vsel %vm792_vm3, %v795_v23, %v797_v26 }
 0x12a   : > { %v1434_v44 = vpop.eup %1433  ;;  %v547_v39 = vxor.u32 2147483648, %v1432_v25  ;;  %v414_v58 = vsel %vm1284_vm4, 0, %v1283_v32  ;;  %v1913_v51 = vmul.u32.u64.low %v1868_v12, %v806_v34  ;;  %v1914_v31 = vmul.u32.u64.high %v1868_v12, %v806_v34, %v1913_v51 }
 0x12b   : > { %v544_v45 = vxor.u32 2147483648, %v1434_v44  ;;  %v415_v57 = vsub.s32 32, %v414_v58  ;;  %v419_v1 = vsub.s32 4294967266, %v414_v58  ;;  %v957_v62 = vand.u32 3, %v1842_v33  ;;  %v1348_v33 = vpop.f32.mrf.mxu1 }
 0x12c   : > { %v548_v18 = vsel %vm546_vm11, %v547_v39, %v1434_v44  ;;  %v817_v48 = vadd.s32 1, %v1905_v35  ;;  %v1293_v0 = vadd.s32 4294967169, %v659_v37  ;;  %v416_v16 = vshll.u32 %v1855_v60, %v414_v58 }
 0x12d   : > { %v545_v41 = vsel %vm543_vm13, %v1432_v25, %v544_v45  ;;  %v417_v3 = vshrl.u32 %v399_v4, %v415_v57  ;;  %v420_v38 = vadd.s32 127, %v419_v1  ;;  %v432_v47 = vsel %vm1885_vm1, 0, %v430_v20 }
 0x12e   : > { %v549_v2 = vsel %vm542_vm15, %v545_v41, %v548_v18  ;;  %v814_v7 = vmul.u32 %v1868_v12, %v798_v59  ;;  %vm816_vm5 = vc.u32 %v1914_v31, %v1904_v42  ;;  %v665_v8 = vadd.s32 1, %v1293_v0 }
 0x12f   : > { %v550_v5 = vsel %vm539_vm0, nan, %v549_v2  ;;  %v418_v49 = vor.u32 %v417_v3, %v416_v16  ;;  %v421_v60 = vshll.u32 %v420_v38, 23  ;;  %v818_v4 = vsel %vm816_vm5, %v817_v48, %v1905_v35 }
 0x130   : > { %1176 = vst [vmem:[%s1934_s11 + $0x8] sm:$0xff] %v550_v5  ;;  %v819_v13 = vadd.s32 %v818_v4, %v814_v7  ;;  %v655_v11 = vand.u32 2147483647, %v1835_v27  ;;  %vm962_vm6 = vcmp.eq.s32.totalorder %v957_v62, 2  ;;  %vm666_vm7 = vcmp.gt.s32.totalorder %v665_v8, 0 }
 0x131   : > { %v1436_v55 = vpop.eup %1435  ;;  %v422_v61 = vor.u32 4788187, %v421_v60  ;;  %v1940_v12 = vadd.f32 %v1348_v33, %v1629_v10  ;;  %v436_v30 = vadd.s32 3, %v432_v47  ;;  %v667_v19 = vsel %vm666_vm7, %v665_v8, 0 }
 0x132   : > { %v1438_v9 = vpop.eup %1437  ;;  %v963_v15 = vxor.u32 2147483648, %v1436_v55  ;;  %v820_v17 = vadd.s32 536870912, %v819_v13  ;;  %v425_v36 = vcvt.s32.f32 %v418_v49  ;;  %v669_v21 = vand.u32 31, %v667_v19 }
 0x133   : > { %v960_v53 = vxor.u32 2147483648, %v1438_v9  ;;  %v423_v20 = vand.u32 2147483647, %v422_v61  ;;  %vm959_vm8 = vcmp.eq.s32.totalorder %v957_v62, 0  ;;  %v662_v24 = vand.u32 8388607, %v655_v11 }
 0x134   : > { %v964_v32 = vsel %vm962_vm6, %v963_v15, %v1438_v9  ;;  %v1942_v23 = vshrl.u32 %v820_v17, 30  ;;  %vm958_vm9 = vcmp.lt.s32.totalorder %v957_v62, 2  ;;  %v670_v26 = vsub.s32 32, %v669_v21 }
 0x135   : > { %v961_v6 = vsel %vm959_vm8, %v1436_v55, %v960_v53  ;;  %v426_v25 = vmul.f32 %v425_v36, %v423_v20  ;;  %vm955_vm11 = vweird.f32 %v1635_v14  ;;  %v1948_v34 = vand.u32 3, %v436_v30 }
 0x136   : > { %v965_v28 = vsel %vm958_vm9, %v961_v6, %v964_v32  ;;  %v822_v35 = vshll.u32 %v1942_v23, 30  ;;  %v673_v37 = vshrl.u32 %v1527_v50, %v670_v26  ;;  %v663_v58 = vor.u32 8388608, %v662_v24 }
 0x137   : > { %v966_v44 = vsel %vm955_vm11, nan, %v965_v28  ;;  %v427_v39 = vxor.u32 2147483648, %v426_v25  ;;  %v676_v51 = vshrl.u32 %v1528_v52, %v670_v26  ;;  %v1074_v18 = vand.u32 2139095040, %v1940_v12 }
 0x138   : > { %1180 = vst [vmem:[%s1934_s11 + $0x28] sm:$0xff] %v966_v44  ;;  %v1952_v45 = vsub.s32 %v819_v13, %v822_v35  ;;  %v668_v57 = vshrl.u32 %v667_v19, 5  ;;  %v672_v1 = vshll.u32 %v1526_v46, %v669_v21  ;;  %v679_v59 = vshrl.u32 %v1529_v54, %v670_v26 }
 0x139   : > { %v428_v14 = vsel %vm345_vm10, %v427_v39, %v426_v25  ;;  %v675_v48 = vshll.u32 %v1527_v50, %v669_v21  ;;  %v678_v0 = vshll.u32 %v1528_v52, %v669_v21  ;;  %v681_v16 = vshll.u32 %v1529_v54, %v669_v21 }
 0x13a   : > { %v431_v41 = vsel %vm1885_vm1, %v1644_v22, %v428_v14  ;;  %v825_v62 = vsub.s32 0, %v1952_v45  ;;  %v674_v2 = vor.u32 %v673_v37, %v672_v1  ;;  %v682_v3 = vshrl.u32 %v1530_v56, %v670_v26 }
 0x13b   : > { %1439 = vcosq.f32 %v431_v41  ;;  %v677_v5 = vor.u32 %v676_v51, %v675_v48  ;;  %v680_v47 = vor.u32 %v679_v59, %v678_v0  ;;  %v684_v29 = vshll.u32 %v1530_v56, %v669_v21 }
 0x13c   : > { %1441 = vsinq.f32 %v431_v41  ;;  %v1298_v38 = vmin.u32 %v825_v62, %v1952_v45  ;;  %v683_v7 = vor.u32 %v682_v3, %v681_v16  ;;  %v685_v33 = vshrl.u32 %v1531_v63, %v670_v26 }
 0x13d   : > { %v703_v49 = vshll.u32 %v663_v58, 8  ;;  %v671_v4 = vshrl.u32 %v1526_v46, %v670_v26  ;;  %vm687_vm10 = vcmp.lt.s32.totalorder %v668_v57, 1  ;;  %v1075_v8 = vshrl.u32 %v1074_v18, 23 }
 0x13e   : > { %v827_v60 = vclz %v1298_v38  ;;  %v686_v13 = vor.u32 %v685_v33, %v684_v29  ;;  %vm688_vm12 = vcmp.lt.s32.totalorder %v668_v57, 2  ;;  %vm689_vm13 = vcmp.lt.s32.totalorder %v668_v57, 3 }
 0x13f   : > { %vm690_vm14 = vcmp.lt.s32.totalorder %v668_v57, 4  ;;  %v695_v9 = vsel %vm687_vm10, %v674_v2, %v677_v5  ;;  %v691_v30 = vsel %vm687_vm10, %v671_v4, %v674_v2  ;;  %v699_v19 = vsel %vm687_vm10, %v677_v5, %v680_v47 }
 0x140   : > { %v1299_v55 = vadd.s32 4294967294, %v827_v60  ;;  %v692_v61 = vsel %vm690_vm14, %v680_v47, 2102212464  ;;  %v696_v15 = vsel %vm690_vm14, %v683_v7, 920167782  ;;  %vm761_vm0 = vcmp.lt.s32.totalorder %v1651_v40, 0 }
 0x141   : > { %v697_v17 = vsel %vm689_vm13, %v680_v47, %v696_v15  ;;  %v700_v53 = vsel %vm690_vm14, %v686_v13, 1326507024  ;;  %v693_v20 = vsel %vm689_vm13, %v677_v5, %v692_v61  ;;  %v815_v26 = vadd.s32 %v1904_v42, %v1914_v31 }
 0x142   : > { %vm1300_vm15 = vcmp.lt.s32.totalorder %v1299_v55, 0  ;;  %v698_v36 = vsel %vm688_vm12, %v695_v9, %v697_v17  ;;  %v701_v21 = vsel %vm689_vm13, %v683_v7, %v700_v53  ;;  %v1071_v37 = vand.u32 2147483647, %v1940_v12 }
 0x143   : > { %v830_v32 = vsel %vm1300_vm15, 0, %v1299_v55  ;;  %v702_v24 = vsel %vm688_vm12, %v699_v19, %v701_v21  ;;  %v1974_v6 = vmul.u32.u64.low %v703_v49, %v698_v36  ;;  %v1975_v25 = vmul.u32.u64.high %v703_v49, %v698_v36, %v1974_v6 }
 0x144   : > { %v831_v28 = vsub.s32 32, %v830_v32  ;;  %v835_v35 = vsub.s32 4294967266, %v830_v32  ;;  %v1981_v44 = vmul.u32.u64.low %v703_v49, %v702_v24  ;;  %v1982_v39 = vmul.u32.u64.high %v703_v49, %v702_v24, %v1981_v44 }
 0x145   : > { %v1309_v58 = vadd.s32 4294967169, %v1075_v8  ;;  %v832_v51 = vshll.u32 %v1952_v45, %v830_v32  ;;  %v694_v1 = vsel %vm688_vm12, %v691_v30, %v693_v20  ;;  %vm438_vm1 = vcmp.lt.s32.totalorder %v1948_v34, 2  ;;  %v314_v8 = vpop.f32.mrf.mxu0 }
 0x146   : > { %v833_v18 = vshrl.u32 %v815_v26, %v831_v28  ;;  %v836_v14 = vadd.s32 127, %v835_v35  ;;  %v845_v59 = vsub.s32 4, %v1942_v23  ;;  %v713_v42 = vadd.s32 1, %v1975_v25 }
 0x147   : > { %v1081_v31 = vadd.s32 1, %v1309_v58  ;;  %vm439_vm2 = vcmp.eq.s32.totalorder %v1948_v34, 0  ;;  %vm442_vm3 = vcmp.eq.s32.totalorder %v1948_v34, 2  ;;  %v710_v2 = vmul.u32 %v703_v49, %v694_v1 }
 0x148   : > { %v1440_v41 = vpop.eup %1439  ;;  %v834_v62 = vor.u32 %v833_v18, %v832_v51  ;;  %v837_v48 = vshll.u32 %v836_v14, 23  ;;  %vm712_vm4 = vc.u32 %v1982_v39, %v1974_v6  ;;  %v1078_v38 = vand.u32 8388607, %v1071_v37 }
 0x149   : > { %v1442_v0 = vpop.eup %1441  ;;  %v443_v45 = vxor.u32 2147483648, %v1440_v41  ;;  %vm1082_vm5 = vcmp.gt.s32.totalorder %v1081_v31, 0  ;;  %v714_v3 = vsel %vm712_vm4, %v713_v42, %v1975_v25  ;;  %v846_v47 = vsel %vm761_vm0, %v845_v59, %v1942_v23 }
 0x14a   : > { %v440_v57 = vxor.u32 2147483648, %v1442_v0  ;;  %v838_v16 = vor.u32 4788187, %v837_v48  ;;  %v715_v7 = vadd.s32 %v714_v3, %v710_v2  ;;  %v1083_v29 = vsel %vm1082_vm5, %v1081_v31, 0 }
 0x14b   : > { %v444_v5 = vsel %vm442_vm3, %v443_v45, %v1442_v0  ;;  %v841_v60 = vcvt.s32.f32 %v834_v62  ;;  %v1085_v4 = vand.u32 31, %v1083_v29  ;;  %vm435_vm6 = vweird.f32 %v1644_v22 }
 0x14c   : > { %v441_v33 = vsel %vm439_vm2, %v1440_v41, %v440_v57  ;;  %v839_v49 = vand.u32 2147483647, %v838_v16  ;;  %vm2007_vm7 = vcmp.le.f32.partialorder %v759_v43, 0.7853982  ;;  %v716_v23 = vadd.s32 536870912, %v715_v7 }
 0x14d   : > { %v445_v13 = vsel %vm438_vm1, %v441_v33, %v444_v5  ;;  %v848_v15 = vsel %vm2007_vm7, 0, %v846_v47  ;;  %v1086_v30 = vsub.s32 32, %v1085_v4  ;;  %v1079_v22 = vor.u32 8388608, %v1078_v38 }
 0x14e   : > { %v446_v61 = vsel %vm435_vm6, nan, %v445_v13  ;;  %v842_v9 = vmul.f32 %v841_v60, %v839_v49  ;;  %v2014_v17 = vshrl.u32 %v716_v23, 30  ;;  %v1088_v34 = vshll.u32 %v1526_v46, %v1085_v4 }
 0x14f   : > { %1175 = vst [vmem:[%s1934_s11] sm:$0xff] %v446_v61  ;;  %v2018_v19 = vadd.f32 %v1629_v10, %v314_v8  ;;  %v1089_v53 = vshrl.u32 %v1527_v50, %v1086_v30  ;;  %v1091_v20 = vshll.u32 %v1527_v50, %v1085_v4  ;;  %v1092_v36 = vshrl.u32 %v1528_v52, %v1086_v30 }
 0x150   : > { %v843_v43 = vxor.u32 2147483648, %v842_v9  ;;  %v718_v21 = vshll.u32 %v2014_v17, 30  ;;  %v1094_v32 = vshll.u32 %v1528_v52, %v1085_v4  ;;  %v1095_v24 = vshrl.u32 %v1529_v54, %v1086_v30 }
 0x151   : > { %v1098_v25 = vshrl.u32 %v1530_v56, %v1086_v30  ;;  %v1084_v10 = vshrl.u32 %v1083_v29, 5  ;;  %v1090_v28 = vor.u32 %v1089_v53, %v1088_v34  ;;  %v1097_v35 = vshll.u32 %v1529_v54, %v1085_v4 }
 0x152   : > { %v844_v26 = vsel %vm761_vm0, %v843_v43, %v842_v9  ;;  %v2033_v58 = vsub.s32 %v715_v7, %v718_v21  ;;  %v1093_v51 = vor.u32 %v1092_v36, %v1091_v20  ;;  %v1096_v18 = vor.u32 %v1095_v24, %v1094_v32 }
 0x153   : > { %v847_v44 = vsel %vm2007_vm7, %v1651_v40, %v844_v26  ;;  %v1099_v14 = vor.u32 %v1098_v25, %v1097_v35  ;;  %v1100_v1 = vshll.u32 %v1530_v56, %v1085_v4  ;;  %v1101_v59 = vshrl.u32 %v1531_v63, %v1086_v30 }
 0x154   : > { %1443 = vcosq.f32 %v847_v44  ;;  %v721_v42 = vsub.s32 0, %v2033_v58  ;;  %v852_v31 = vadd.s32 3, %v848_v15  ;;  %vm1106_vm8 = vcmp.lt.s32.totalorder %v1084_v10, 4 }
 0x155   : > { %1445 = vsinq.f32 %v847_v44  ;;  %v1102_v41 = vor.u32 %v1101_v59, %v1100_v1  ;;  %v554_v62 = vand.u32 2139095040, %v2018_v19  ;;  %v1087_v0 = vshrl.u32 %v1526_v46, %v1086_v30 }
 0x156   : > { %v1294_v48 = vmin.u32 %v721_v42, %v2033_v58  ;;  %vm1103_vm9 = vcmp.lt.s32.totalorder %v1084_v10, 1  ;;  %v1108_v45 = vsel %vm1106_vm8, %v1096_v18, 2102212464  ;;  %vm1104_vm11 = vcmp.lt.s32.totalorder %v1084_v10, 2 }
 0x157   : > { %v1111_v2 = vsel %vm1103_vm9, %v1090_v28, %v1093_v51  ;;  %v1112_v57 = vsel %vm1106_vm8, %v1099_v14, 920167782  ;;  %v1119_v16 = vshll.u32 %v1079_v22, 8  ;;  %vm1105_vm10 = vcmp.lt.s32.totalorder %v1084_v10, 3 }
 0x158   : > { %v723_v3 = vclz %v1294_v48  ;;  %v1107_v38 = vsel %vm1103_vm9, %v1087_v0, %v1090_v28  ;;  %v1115_v5 = vsel %vm1103_vm9, %v1093_v51, %v1096_v18  ;;  %v1109_v47 = vsel %vm1105_vm10, %v1093_v51, %v1108_v45  ;;  %v334_v28 = vpop.f32.mrf.mxu1 }
 0x159   : > { %v1113_v7 = vsel %vm1105_vm10, %v1096_v18, %v1112_v57  ;;  %v1116_v29 = vsel %vm1106_vm8, %v1102_v41, 1326507024  ;;  %v555_v33 = vshrl.u32 %v554_v62, 23  ;;  %v853_v49 = vand.u32 3, %v852_v31  ;;  %v1463_v31 = vld [vmem:[%s2254_s2] ss:$0 sm:$0xff] }
 0x15a   : > { %v1295_v60 = vadd.s32 4294967294, %v723_v3  ;;  %v1114_v4 = vsel %vm1104_vm11, %v1111_v2, %v1113_v7  ;;  %v1117_v8 = vsel %vm1105_vm10, %v1099_v14, %v1116_v29  ;;  %v1110_v9 = vsel %vm1104_vm11, %v1107_v38, %v1109_v47 }
 0x15b   : > { %v1118_v13 = vsel %vm1104_vm11, %v1115_v5, %v1117_v8  ;;  %v2046_v55 = vmul.u32.u64.low %v1119_v16, %v1114_v4  ;;  %v2047_v23 = vmul.u32.u64.high %v1119_v16, %v1114_v4, %v2046_v55  ;;  %v1289_v61 = vadd.s32 4294967169, %v555_v33 }
 0x15c   : > { %vm1296_vm12 = vcmp.lt.s32.totalorder %v1295_v60, 0  ;;  %v2051_v15 = vmul.u32.u64.low %v1119_v16, %v1118_v13  ;;  %v2052_v30 = vmul.u32.u64.high %v1119_v16, %v1118_v13, %v2051_v15  ;;  %v551_v34 = vand.u32 2147483647, %v2018_v19 }
 0x15d   : > { %v726_v22 = vsel %vm1296_vm12, 0, %v1295_v60  ;;  %v561_v43 = vadd.s32 1, %v1289_v61  ;;  %vm851_vm13 = vweird.f32 %v1651_v40  ;;  %v711_v53 = vadd.s32 %v1974_v6, %v1982_v39 }
 0x15e   : > { %v727_v20 = vsub.s32 32, %v726_v22  ;;  %v731_v36 = vsub.s32 4294967266, %v726_v22  ;;  %vm858_vm14 = vcmp.eq.s32.totalorder %v853_v49, 2  ;;  %v1126_v21 = vmul.u32 %v1119_v16, %v1110_v9 }
 0x15f   : > { %v1129_v32 = vadd.s32 1, %v2047_v23  ;;  %vm562_vm15 = vcmp.gt.s32.totalorder %v561_v43, 0  ;;  %v728_v25 = vshll.u32 %v2033_v58, %v726_v22  ;;  %vm1128_vm0 = vc.u32 %v2052_v30, %v2046_v55 }
 0x160   : > { %v729_v26 = vshrl.u32 %v711_v53, %v727_v20  ;;  %v732_v10 = vadd.s32 127, %v731_v36  ;;  %v558_v39 = vand.u32 8388607, %v551_v34  ;;  %v563_v51 = vsel %vm562_vm15, %v561_v43, 0 }
 0x161   : > { %v1444_v24 = vpop.eup %1443  ;;  %v1130_v6 = vsel %vm1128_vm0, %v1129_v32, %v2047_v23  ;;  %vm855_vm1 = vcmp.eq.s32.totalorder %v853_v49, 0  ;;  %vm657_vm2 = vcmp.lt.s32.totalorder %v1835_v27, 0  ;;  %v565_v42 = vand.u32 31, %v563_v51 }
 0x162   : > { %v1446_v35 = vpop.eup %1445  ;;  %v859_v44 = vxor.u32 2147483648, %v1444_v24  ;;  %v730_v14 = vor.u32 %v729_v26, %v728_v25  ;;  %v733_v1 = vshll.u32 %v732_v10, 23  ;;  %v1131_v59 = vadd.s32 %v1130_v6, %v1126_v21 }
 0x163   : > { %v856_v18 = vxor.u32 2147483648, %v1446_v35  ;;  %v2070_v41 = vadd.f32 %v1463_v31, %v334_v28  ;;  %vm854_vm3 = vcmp.lt.s32.totalorder %v853_v49, 2  ;;  %vm2074_vm4 = vcmp.le.f32.partialorder %v655_v11, 0.7853982 }
 0x164   : > { %v860_v58 = vsel %vm858_vm14, %v859_v44, %v1446_v35  ;;  %v734_v0 = vor.u32 4788187, %v733_v1  ;;  %v1132_v45 = vadd.s32 536870912, %v1131_v59  ;;  %v741_v57 = vsub.s32 4, %v2014_v17 }
 0x165   : > { %v857_v62 = vsel %vm855_vm1, %v1444_v24, %v856_v18  ;;  %v559_v16 = vor.u32 8388608, %v558_v39  ;;  %v566_v3 = vsub.s32 32, %v565_v42  ;;  %v737_v47 = vcvt.s32.f32 %v730_v14 }
 0x166   : > { %v861_v2 = vsel %vm854_vm3, %v857_v62, %v860_v58  ;;  %v735_v5 = vand.u32 2147483647, %v734_v0  ;;  %v2081_v7 = vshrl.u32 %v1132_v45, 30  ;;  %v970_v49 = vand.u32 2139095040, %v2070_v41 }
 0x167   : > { %v862_v38 = vsel %vm851_vm13, nan, %v861_v2  ;;  %v569_v11 = vshrl.u32 %v1527_v50, %v566_v3  ;;  %v572_v29 = vshrl.u32 %v1528_v52, %v566_v3  ;;  %v575_v33 = vshrl.u32 %v1529_v54, %v566_v3 }
 0x168   : > { %1179 = vst [vmem:[%s1934_s11 + $0x20] sm:$0xff] %v862_v38  ;;  %v738_v60 = vmul.f32 %v737_v47, %v735_v5  ;;  %v1134_v4 = vshll.u32 %v2081_v7, 30  ;;  %v568_v8 = vshll.u32 %v1526_v46, %v565_v42  ;;  %v571_v40 = vshll.u32 %v1527_v50, %v565_v42 }
 0x169   : > { %v564_v13 = vshrl.u32 %v563_v51, 5  ;;  %v574_v23 = vshll.u32 %v1528_v52, %v565_v42  ;;  %v577_v61 = vshll.u32 %v1529_v54, %v565_v42  ;;  %v578_v9 = vshrl.u32 %v1530_v56, %v566_v3 }
 0x16a   : > { %v739_v15 = vxor.u32 2147483648, %v738_v60  ;;  %v1135_v22 = vsub.s32 %v1131_v59, %v1134_v4  ;;  %v570_v43 = vor.u32 %v569_v11, %v568_v8  ;;  %v573_v53 = vor.u32 %v572_v29, %v571_v40 }
 0x16b   : > { %v576_v20 = vor.u32 %v575_v33, %v574_v23  ;;  %v579_v36 = vor.u32 %v578_v9, %v577_v61  ;;  %v580_v21 = vshll.u32 %v1530_v56, %v565_v42  ;;  %v581_v32 = vshrl.u32 %v1531_v63, %v566_v3 }
 0x16c   : > { %v740_v24 = vsel %vm657_vm2, %v739_v15, %v738_v60  ;;  %v742_v25 = vsel %vm657_vm2, %v741_v57, %v2014_v17  ;;  %v1137_v26 = vsub.s32 0, %v1135_v22  ;;  %v599_v10 = vshll.u32 %v559_v16, 8 }
 0x16d   : > { %v743_v28 = vsel %vm2074_vm4, %v1835_v27, %v740_v24  ;;  %v567_v35 = vshrl.u32 %v1526_v46, %v566_v3  ;;  %v582_v44 = vor.u32 %v581_v32, %v580_v21  ;;  %v971_v6 = vshrl.u32 %v970_v49, 23 }
 0x16e   : > { %1447 = vcosq.f32 %v743_v28  ;;  %v1310_v39 = vmin.u32 %v1137_v26, %v1135_v22  ;;  %vm583_vm5 = vcmp.lt.s32.totalorder %v564_v13, 1  ;;  %vm586_vm6 = vcmp.lt.s32.totalorder %v564_v13, 4 }
 0x16f   : > { %1449 = vsinq.f32 %v743_v28  ;;  %v588_v51 = vsel %vm586_vm6, %v576_v20, 2102212464  ;;  %v591_v18 = vsel %vm583_vm5, %v570_v43, %v573_v53  ;;  %v592_v14 = vsel %vm586_vm6, %v579_v36, 920167782 }
 0x170   : > { %v1139_v1 = vclz %v1310_v39  ;;  %vm584_vm7 = vcmp.lt.s32.totalorder %v564_v13, 2  ;;  %vm585_vm8 = vcmp.lt.s32.totalorder %v564_v13, 3  ;;  %v587_v17 = vsel %vm583_vm5, %v567_v35, %v570_v43 }
 0x171   : > { %v589_v59 = vsel %vm585_vm8, %v573_v53, %v588_v51  ;;  %v593_v58 = vsel %vm585_vm8, %v576_v20, %v592_v14  ;;  %v595_v42 = vsel %vm583_vm5, %v573_v53, %v576_v20  ;;  %v596_v31 = vsel %vm586_vm6, %v582_v44, 1326507024 }
 0x172   : > { %v744_v62 = vsel %vm2074_vm4, 0, %v742_v25  ;;  %v1311_v0 = vadd.s32 4294967294, %v1139_v1  ;;  %v594_v45 = vsel %vm584_vm7, %v591_v18, %v593_v58  ;;  %v597_v2 = vsel %vm585_vm8, %v579_v36, %v596_v31 }
 0x173   : > { %v590_v57 = vsel %vm584_vm7, %v587_v17, %v589_v59  ;;  %v598_v16 = vsel %vm584_vm7, %v595_v42, %v597_v2  ;;  %v2107_v3 = vmul.u32.u64.low %v599_v10, %v594_v45  ;;  %v2108_v38 = vmul.u32.u64.high %v599_v10, %v594_v45, %v2107_v3 }
 0x174   : > { %vm1312_vm9 = vcmp.lt.s32.totalorder %v1311_v0, 0  ;;  %v2111_v5 = vmul.u32.u64.low %v599_v10, %v598_v16  ;;  %v2112_v47 = vmul.u32.u64.high %v599_v10, %v598_v16, %v2111_v5  ;;  %v1305_v11 = vadd.s32 4294967169, %v971_v6 }
 0x175   : > { %v748_v29 = vadd.s32 3, %v744_v62  ;;  %v1142_v33 = vsel %vm1312_vm9, 0, %v1311_v0  ;;  %v1127_v48 = vadd.s32 %v2046_v55, %v2052_v30  ;;  %v606_v8 = vmul.u32 %v599_v10, %v590_v57 }
 0x176   : > { %v1143_v49 = vsub.s32 32, %v1142_v33  ;;  %v1147_v60 = vsub.s32 4294967266, %v1142_v33  ;;  %v977_v4 = vadd.s32 1, %v1305_v11  ;;  %v609_v40 = vadd.s32 1, %v2108_v38 }
 0x177   : > { %v967_v13 = vand.u32 2147483647, %v2070_v41  ;;  %v1144_v23 = vshll.u32 %v1135_v22, %v1142_v33  ;;  %vm608_vm11 = vc.u32 %v2112_v47, %v2107_v3  ;;  %v749_v15 = vand.u32 3, %v748_v29 }
 0x178   : > { %v1145_v61 = vshrl.u32 %v1127_v48, %v1143_v49  ;;  %v1148_v9 = vadd.s32 127, %v1147_v60  ;;  %v610_v43 = vsel %vm608_vm11, %v609_v40, %v2108_v38  ;;  %vm978_vm10 = vcmp.gt.s32.totalorder %v977_v4, 0 }
 0x179   : > { %v611_v30 = vadd.s32 %v610_v43, %v606_v8  ;;  %v979_v20 = vsel %vm978_vm10, %v977_v4, 0  ;;  %vm747_vm12 = vweird.f32 %v1835_v27  ;;  %vm1073_vm13 = vcmp.lt.s32.totalorder %v1940_v12, 0 }
 0x17a   : > { %v1146_v53 = vor.u32 %v1145_v61, %v1144_v23  ;;  %v1149_v55 = vshll.u32 %v1148_v9, 23  ;;  %v1157_v22 = vsub.s32 4, %v2081_v7  ;;  %v981_v21 = vand.u32 31, %v979_v20 }
 0x17b   : > { %v1448_v36 = vpop.eup %1447  ;;  %vm2126_vm14 = vcmp.le.f32.partialorder %v1071_v37, 0.7853982  ;;  %v612_v10 = vadd.s32 536870912, %v611_v30  ;;  %v974_v28 = vand.u32 8388607, %v967_v13  ;;  %vm751_vm15 = vcmp.eq.s32.totalorder %v749_v15, 0 }
 0x17c   : > { %v1450_v32 = vpop.eup %1449  ;;  %v755_v24 = vxor.u32 2147483648, %v1448_v36  ;;  %v1150_v26 = vor.u32 4788187, %v1149_v55  ;;  %vm754_vm0 = vcmp.eq.s32.totalorder %v749_v15, 2  ;;  %v982_v44 = vsub.s32 32, %v981_v21 }
 0x17d   : > { %v752_v35 = vxor.u32 2147483648, %v1450_v32  ;;  %v1153_v51 = vcvt.s32.f32 %v1146_v53  ;;  %v2132_v18 = vshrl.u32 %v612_v10, 30  ;;  %vm750_vm1 = vcmp.lt.s32.totalorder %v749_v15, 2 }
 0x17e   : > { %v756_v6 = vsel %vm754_vm0, %v755_v24, %v1450_v32  ;;  %v1151_v39 = vand.u32 2147483647, %v1150_v26  ;;  %v1158_v14 = vsel %vm1073_vm13, %v1157_v22, %v2081_v7  ;;  %v985_v1 = vshrl.u32 %v1527_v50, %v982_v44 }
 0x17f   : > { %v753_v37 = vsel %vm751_vm15, %v1448_v36, %v752_v35  ;;  %v614_v58 = vshll.u32 %v2132_v18, 30  ;;  %v975_v42 = vor.u32 8388608, %v974_v28  ;;  %v984_v62 = vshll.u32 %v1526_v46, %v981_v21 }
 0x180   : > { %v757_v17 = vsel %vm750_vm1, %v753_v37, %v756_v6  ;;  %v1154_v59 = vmul.f32 %v1153_v51, %v1151_v39  ;;  %v988_v0 = vshrl.u32 %v1528_v52, %v982_v44  ;;  %v991_v45 = vshrl.u32 %v1529_v54, %v982_v44 }
 0x181   : > { %v758_v31 = vsel %vm747_vm12, nan, %v757_v17  ;;  %v615_v57 = vsub.s32 %v611_v30, %v614_v58  ;;  %v980_v7 = vshrl.u32 %v979_v20, 5  ;;  %v987_v16 = vshll.u32 %v1527_v50, %v981_v21 }
 0x182   : > { %1178 = vst [vmem:[%s1934_s11 + $0x18] sm:$0xff] %v758_v31  ;;  %v1155_v2 = vxor.u32 2147483648, %v1154_v59  ;;  %v986_v38 = vor.u32 %v985_v1, %v984_v62  ;;  %v990_v5 = vshll.u32 %v1528_v52, %v981_v21  ;;  %v993_v11 = vshll.u32 %v1529_v54, %v981_v21 }
 0x183   : > { %v994_v27 = vshrl.u32 %v1530_v56, %v982_v44  ;;  %v617_v33 = vsub.s32 0, %v615_v57  ;;  %v996_v48 = vshll.u32 %v1530_v56, %v981_v21  ;;  %v997_v49 = vshrl.u32 %v1531_v63, %v982_v44 }
 0x184   : > { %v1156_v29 = vsel %vm1073_vm13, %v1155_v2, %v1154_v59  ;;  %v989_v50 = vor.u32 %v988_v0, %v987_v16  ;;  %v992_v4 = vor.u32 %v991_v45, %v990_v5  ;;  %v1160_v40 = vsel %vm2126_vm14, 0, %v1158_v14 }
 0x185   : > { %v1159_v60 = vsel %vm2126_vm14, %v1940_v12, %v1156_v29  ;;  %v995_v8 = vor.u32 %v994_v27, %v993_v11  ;;  %v1290_v52 = vmin.u32 %v617_v33, %v615_v57  ;;  %v998_v54 = vor.u32 %v997_v49, %v996_v48 }
 0x186   : > { %1451 = vcosq.f32 %v1159_v60  ;;  %v983_v23 = vshrl.u32 %v1526_v46, %v982_v44  ;;  %v1015_v61 = vshll.u32 %v975_v42, 8  ;;  %vm999_vm2 = vcmp.lt.s32.totalorder %v980_v7, 1 }
 0x187   : > { %1453 = vsinq.f32 %v1159_v60  ;;  %v619_v56 = vclz %v1290_v52  ;;  %vm1001_vm3 = vcmp.lt.s32.totalorder %v980_v7, 3  ;;  %vm1002_vm4 = vcmp.lt.s32.totalorder %v980_v7, 4 }
 0x188   : > { %v1004_v63 = vsel %vm1002_vm4, %v992_v4, 2102212464  ;;  %v1007_v9 = vsel %vm999_vm2, %v986_v38, %v989_v50  ;;  %v1008_v15 = vsel %vm1002_vm4, %v995_v8, 920167782  ;;  %v1011_v43 = vsel %vm999_vm2, %v989_v50, %v992_v4 }
 0x189   : > { %v1291_v53 = vadd.s32 4294967294, %v619_v56  ;;  %vm1000_vm5 = vcmp.lt.s32.totalorder %v980_v7, 2  ;;  %v1009_v55 = vsel %vm1001_vm3, %v992_v4, %v1008_v15  ;;  %v1012_v30 = vsel %vm1002_vm4, %v998_v54, 1326507024 }
 0x18a   : > { %v1003_v20 = vsel %vm999_vm2, %v983_v23, %v986_v38  ;;  %v1005_v36 = vsel %vm1001_vm3, %v989_v50, %v1004_v63  ;;  %v1010_v22 = vsel %vm1000_vm5, %v1007_v9, %v1009_v55  ;;  %v1013_v21 = vsel %vm1001_vm3, %v995_v8, %v1012_v30 }
 0x18b   : > { %vm1292_vm6 = vcmp.lt.s32.totalorder %v1291_v53, 0  ;;  %v1014_v46 = vsel %vm1000_vm5, %v1011_v43, %v1013_v21  ;;  %v2161_v32 = vmul.u32.u64.low %v1015_v61, %v1010_v22  ;;  %v2162_v24 = vmul.u32.u64.high %v1015_v61, %v1010_v22, %v2161_v32 }
 0x18c   : > { %v1164_v25 = vadd.s32 3, %v1160_v40  ;;  %v622_v26 = vsel %vm1292_vm6, 0, %v1291_v53  ;;  %v2164_v10 = vmul.u32.u64.low %v1015_v61, %v1014_v46  ;;  %v2165_v28 = vmul.u32.u64.high %v1015_v61, %v1014_v46, %v2164_v10 }
 0x18d   : > { %v607_v35 = vadd.s32 %v2107_v3, %v2112_v47  ;;  %v623_v44 = vsub.s32 32, %v622_v26  ;;  %v627_v6 = vsub.s32 4294967266, %v622_v26  ;;  %v1006_v39 = vsel %vm1000_vm5, %v1003_v20, %v1005_v36 }
 0x18e   : > { %v624_v51 = vshll.u32 %v615_v57, %v622_v26  ;;  %v1025_v1 = vadd.s32 1, %v2162_v24  ;;  %v1165_v17 = vand.u32 3, %v1164_v25  ;;  %v1022_v59 = vmul.u32 %v1015_v61, %v1006_v39 }
 0x18f   : > { %v625_v37 = vshrl.u32 %v607_v35, %v623_v44  ;;  %v628_v14 = vadd.s32 127, %v627_v6  ;;  %vm1024_vm7 = vc.u32 %v2165_v28, %v2161_v32  ;;  %vm1163_vm10 = vweird.f32 %v1940_v12 }
 0x190   : > { %v1026_v31 = vsel %vm1024_vm7, %v1025_v1, %v2162_v24  ;;  %vm1170_vm8 = vcmp.eq.s32.totalorder %v1165_v17, 2  ;;  %vm1167_vm9 = vcmp.eq.s32.totalorder %v1165_v17, 0  ;;  %vm1166_vm11 = vcmp.lt.s32.totalorder %v1165_v17, 2 }
 0x191   : > { %v626_v58 = vor.u32 %v625_v37, %v624_v51  ;;  %v629_v42 = vshll.u32 %v628_v14, 23  ;;  %v1027_v0 = vadd.s32 %v1026_v31, %v1022_v59  ;;  %vm553_vm12 = vcmp.lt.s32.totalorder %v2018_v19, 0 }
 0x192   : > { %v637_v60 = vsub.s32 4, %v2132_v18  ;;  %vm552_vm13 = vcmp.le.f32.partialorder %v551_v34, 0.7853982  ;;  %v1023_v9 = vadd.s32 %v2161_v32, %v2165_v28  ;;  %vm643_vm2 = vweird.f32 %v2018_v19 }
 0x193   : > { %v1452_v62 = vpop.eup %1451  ;;  %v630_v45 = vor.u32 4788187, %v629_v42  ;;  %v1028_v57 = vadd.s32 536870912, %v1027_v0  ;;  %v633_v38 = vcvt.s32.f32 %v626_v58  ;;  %vm969_vm3 = vcmp.lt.s32.totalorder %v2070_v41, 0 }
 0x194   : > { %v1454_v3 = vpop.eup %1453  ;;  %v1171_v47 = vxor.u32 2147483648, %v1452_v62  ;;  %v638_v12 = vsel %vm553_vm12, %v637_v60, %v2132_v18  ;;  %vm968_vm4 = vcmp.le.f32.partialorder %v967_v13, 0.7853982 }
 0x195   : > { %v1168_v2 = vxor.u32 2147483648, %v1454_v3  ;;  %v631_v16 = vand.u32 2147483647, %v630_v45  ;;  %v1029_v11 = vshrl.u32 %v1028_v57, 30  ;;  %v640_v23 = vsel %vm552_vm13, 0, %v638_v12 }
 0x196   : > { %v1172_v7 = vsel %vm1170_vm8, %v1171_v47, %v1454_v3  ;;  %v644_v56 = vadd.s32 3, %v640_v23  ;;  %vm1059_vm8 = vweird.f32 %v2070_v41 }
 0x197   : > { %v1169_v5 = vsel %vm1167_vm9, %v1452_v62, %v1168_v2  ;;  %v634_v29 = vmul.f32 %v633_v38, %v631_v16  ;;  %v1030_v48 = vshll.u32 %v1029_v11, 30  ;;  %v1053_v39 = vsub.s32 4, %v1029_v11 }
 0x198   : > { %v1173_v27 = vsel %vm1166_vm11, %v1169_v5, %v1172_v7  ;;  %v645_v34 = vand.u32 3, %v644_v56 }
 0x199   : > { %v1174_v33 = vsel %vm1163_vm10, nan, %v1173_v27  ;;  %v635_v49 = vxor.u32 2147483648, %v634_v29  ;;  %v1031_v50 = vsub.s32 %v1027_v0, %v1030_v48  ;;  %v1054_v14 = vsel %vm969_vm3, %v1053_v39, %v1029_v11 }
 0x19a   : > { %1182 = vst [vmem:[%s1934_s11 + $0x38] sm:$0xff] %v1174_v33  ;;  %vm650_vm15 = vcmp.eq.s32.totalorder %v645_v34, 2  ;;  %vm647_vm0 = vcmp.eq.s32.totalorder %v645_v34, 0  ;;  %vm646_vm1 = vcmp.lt.s32.totalorder %v645_v34, 2  ;;  %v1056_v1 = vsel %vm968_vm4, 0, %v1054_v14 }
 0x19b   : > { %v636_v4 = vsel %vm553_vm12, %v635_v49, %v634_v29  ;;  %v1033_v52 = vsub.s32 0, %v1031_v50 }
 0x19c   : > { %v639_v8 = vsel %vm552_vm13, %v2018_v19, %v636_v4  ;;  %v1060_v19 = vadd.s32 3, %v1056_v1 }
 0x19d   : > { %1455 = vcosq.f32 %v639_v8  ;;  %v1306_v54 = vmin.u32 %v1033_v52, %v1031_v50 }
 0x19e   : > { %1457 = vsinq.f32 %v639_v8  ;;  %v1061_v17 = vand.u32 3, %v1060_v19 }
 0x19f   : > { %v1035_v40 = vclz %v1306_v54 }
 0x1a0   : > { %vm1066_vm5 = vcmp.eq.s32.totalorder %v1061_v17, 2  ;;  %vm1063_vm6 = vcmp.eq.s32.totalorder %v1061_v17, 0  ;;  %vm1062_vm7 = vcmp.lt.s32.totalorder %v1061_v17, 2 }
 0x1a1   : > { %v1307_v61 = vadd.s32 4294967294, %v1035_v40 }
 0x1a3   : > { %vm1308_vm14 = vcmp.lt.s32.totalorder %v1307_v61, 0 }
 0x1a4   : > { %v1038_v63 = vsel %vm1308_vm14, 0, %v1307_v61 }
 0x1a5   : > { %v1039_v15 = vsub.s32 32, %v1038_v63  ;;  %v1043_v43 = vsub.s32 4294967266, %v1038_v63  ;;  %v1040_v53 = vshll.u32 %v1031_v50, %v1038_v63 }
 0x1a7   : > { %v1041_v55 = vshrl.u32 %v1023_v9, %v1039_v15  ;;  %v1044_v30 = vadd.s32 127, %v1043_v43 }
 0x1a9   : > { %v1042_v36 = vor.u32 %v1041_v55, %v1040_v53  ;;  %v1045_v22 = vshll.u32 %v1044_v30, 23 }
 0x1aa   : > { %v1456_v20 = vpop.eup %1455 }
 0x1ab   : > { %v1458_v18 = vpop.eup %1457  ;;  %v651_v21 = vxor.u32 2147483648, %v1456_v20  ;;  %v1046_v24 = vor.u32 4788187, %v1045_v22  ;;  %v1049_v10 = vcvt.s32.f32 %v1042_v36 }
 0x1ac   : > { %v648_v46 = vxor.u32 2147483648, %v1458_v18 }
 0x1ad   : > { %v652_v25 = vsel %vm650_vm15, %v651_v21, %v1458_v18  ;;  %v1047_v32 = vand.u32 2147483647, %v1046_v24 }
 0x1ae   : > { %v649_v26 = vsel %vm647_vm0, %v1456_v20, %v648_v46 }
 0x1af   : > { %v653_v28 = vsel %vm646_vm1, %v649_v26, %v652_v25  ;;  %v1050_v44 = vmul.f32 %v1049_v10, %v1047_v32 }
 0x1b0   : > { %v654_v35 = vsel %vm643_vm2, nan, %v653_v28 }
 0x1b1   : > { %1177 = vst [vmem:[%s1934_s11 + $0x10] sm:$0xff] %v654_v35  ;;  %v1051_v6 = vxor.u32 2147483648, %v1050_v44 }
 0x1b3   : > { %v1052_v51 = vsel %vm969_vm3, %v1051_v6, %v1050_v44 }
 0x1b4   : > { %v1055_v37 = vsel %vm968_vm4, %v2070_v41, %v1052_v51 }
 0x1b5   : > { %1459 = vcosq.f32 %v1055_v37 }
 0x1b6   : > { %1461 = vsinq.f32 %v1055_v37 }
 0x1c2   : > { %v1460_v59 = vpop.eup %1459 }
 0x1c3   : > { %v1462_v58 = vpop.eup %1461  ;;  %v1067_v42 = vxor.u32 2147483648, %v1460_v59 }
 0x1c4   : > { %v1064_v31 = vxor.u32 2147483648, %v1462_v58 }
 0x1c5   : > { %v1068_v62 = vsel %vm1066_vm5, %v1067_v42, %v1462_v58  ;;  %1190 = sbr.rel (!%p1593_p5) target bundleno = 485 (0x1e5), region = 36 }
 0x1c6   : > { %v1065_v13 = vsel %vm1063_vm6, %v1460_v59, %v1064_v31 }
 0x1c7   : > { %v1069_v0 = vsel %vm1062_vm7, %v1065_v13, %v1068_v62 }
 0x1c8   : > { %v1070_v3 = vsel %vm1059_vm8, nan, %v1069_v0 }
 0x1c9   : > { %1181 = vst [vmem:[%s1934_s11 + $0x30] sm:$0xff] %v1070_v3 }
 0x1ca   : > { %s2275_s24 = smov (!%p1193_p11, %s1192_s24), 8 }
 0x1cb   : > { %s2197_s25 = sshll.u32 %s2275_s24, 7 }
 0x1cc   : > { %s1197_s26 = ssub.s32 1024, %s2197_s25 }
 0x1cd   : > { %1198 = vsyncadd %s2192_s20, %s1197_s26  ;;  %p1316_p12 = scmp.ne.s32.totalorder %s2197_s25, 0  ;;  %s1322_s27 = sshll.u32 %s1576_s16, 10 }
 0x1ce   : > { %s2206_s30 = scalar_lea.hbm %s2255_s3, %s1322_s27  ;;  %s1203_s28 = sshll.u32 %s1934_s11, 4  ;;  %s2209_s28 = int_to_ptr.vmem [resolvable:$true] %s1203_s28 }
 0x1cf   : > { %s1464_s4 = scalar_lea.vmem %s2209_s28, %s2197_s25  ;;  %s1532_s5 = smov [#allocation2]  }
 0x1d0   : > { %p1465_p13 = scmp.ne.s32.totalorder %s2209_s28, %s1464_s4  ;;  %s1468_s6 = sshll.u32 %s1532_s5, 4  ;;  %s1469_s6 = int_to_ptr.vmem [resolvable:$false] %s1468_s6 }
 0x1d1   : > { %s1470_s16 = scalar_lea.vmem %s1469_s6, 2048  ;;  %p1471_p2 = scmp.lt.s32.totalorder %s2209_s28, %s1469_s6 }
 0x1d2   : > { %p1466_p0 = pnand %p1465_p13, %p1316_p12  ;;  %p1472_p3 = scmp.lt.s32.totalorder %s1470_s16, %s1464_s4 }
 0x1d4   : > { %p1467_p1 = pneg %p1466_p0  ;;  %p1473_p4 = por %p1472_p3, %p1471_p2 }
 0x1d6   : > { %p1474_p5 = pnand %p1473_p4, %p1467_p1 }
 0x1d8   : > { %1477 = shalt.err (!%p1474_p5)
}
 0x1d9   : > { %s1478_s7 = scalar_lea.hbm %s2206_s30, %s2197_s25  ;;  %s1482_s10 = scalar_lea.hbm %s2255_s3, 3200 }
 0x1da   : > { %p1479_p7 = scmp.ne.s32.totalorder %s2206_s30, %s1478_s7  ;;  %p1483_p10 = scmp.lt.s32.totalorder %s2206_s30, %s2255_s3 }
 0x1db   : > { %p1484_p11 = scmp.lt.s32.totalorder %s1482_s10, %s1478_s7 }
 0x1dc   : > { %p1480_p8 = pnand %p1479_p7, %p1316_p12 }
 0x1dd   : > { %p1485_p13 = por %p1484_p11, %p1483_p10 }
 0x1de   : > { %p1481_p9 = pneg %p1480_p8 }
 0x1e0   : > { %p1486_p0 = pnand %p1485_p13, %p1481_p9 }
 0x1e2   : > { %1489 = shalt.err (!%p1486_p0)
}
 0x1e3   : > { %s1533_s19 = smov 128   ;;  %s1534_s24 = smov 8  }
 0x1e4   : > { %1209 = dma.vmem_to_hbm [thread:$0]  (%p1316_p12), %s2209_s28, %s2197_s25, %s2206_s30, %s2192_s20, %s1533_s19, %s1533_s19, %s1534_s24  }
 0x1e5 PF: > { %p1390_p1 = scmp.ge.s32.totalorder %s1524_s15, 2  ;;  %s1218_s26 = sand.u32 1, %s1512_s12  }
 0x1e6   : > { %s1219_s27 = scalar_lea.sflag [#allocation3], %s1218_s26 }
 0x1e7   : > { %p1387_p2 = pnand %p1390_p1, %p1597_p6 }
 0x1e9   : > { %p1388_p3 = pneg %p1387_p2 }
 0x1eb   : > { %1507 = dma.done.wait (%p1388_p3), %s1219_s27, 1024  }
 0x1ec   : > { %1509 = vsyncadd (%p1388_p3), %s1219_s27, 4294966272  ;;  %p13_p4 = scmp.ge.s32.totalorder %s1580_s18, 6   ;;  %s2270_s12 = smov %s1516_s13 }
 0x1ed   : > { %s2271_s13 = smov %s1520_s14  ;;  %s2272_s14 = smov %s1591_s21 }
 0x1ee   : > { %s2273_s15 = smov %s1580_s18  ;;  %15 = sbr.rel (!%p13_p4) target bundleno = 3 (0x3), region = 67 }
 0x1f3   :  { %1224 = vsyncpa [#allocation3], 1 }
 0x1f4   :  { %1226 = vsyncpa [#allocation3 + $0x1], 1 }

</bundles_post_ra>
